<compile_context>
chip_gen: v6e
topology: v6e:2x2x1
jax: 0.10.0
libtpu: 0.0.40
codegen_flags: <defaults>
</compile_context>

<pallas_src>
import functools

import jax
import jax.numpy as jnp
from jax.experimental import pallas as pl
from jax.experimental.pallas import tpu as pltpu


_DEFAULT_TILE_ROWS = 512  # multiple of 8 (f32 sublane); good pipelining for d=768/1024


def _tile_rows(n, target=_DEFAULT_TILE_ROWS):
    # Full-array block when small (satisfies the (8,128) rule via "equals full dim"),
    # otherwise a fixed multiple-of-8 tile; ragged last block is handled by Pallas.
    return n if n <= target else target


# ---------------------------------------------------------------------------
# Kernel 1: custom LayerNorm (torch-semantics: unbiased std, eps added to std)
# ---------------------------------------------------------------------------
def _layernorm_kernel(x_ref, a_ref, b_ref, o_ref, *, eps, features):
    x = x_ref[...].astype(jnp.float32)                          # (TN, D)
    mean = jnp.sum(x, axis=-1, keepdims=True) * jnp.float32(1.0 / features)
    centered = x - mean
    # torch.Tensor.std default: unbiased (Bessel correction, divide by D-1)
    var_unbiased = jnp.sum(centered * centered, axis=-1, keepdims=True) * jnp.float32(
        1.0 / (features - 1)
    )
    std = jnp.sqrt(var_unbiased)
    inv = pl.reciprocal(std + jnp.float32(eps))                 # one recip per row
    y = centered * inv * a_ref[...].astype(jnp.float32) + b_ref[...].astype(jnp.float32)
    o_ref[...] = y.astype(o_ref.dtype)


def layernorm_pallas(x2d, a_2, b_2, eps=1e-6, tile_rows=_DEFAULT_TILE_ROWS):
    n, d = x2d.shape
    tn = _tile_rows(n, tile_rows)
    a_2 = a_2.reshape(1, d).astype(x2d.dtype)
    b_2 = b_2.reshape(1, d).astype(x2d.dtype)
    kernel = functools.partial(_layernorm_kernel, eps=eps, features=d)
    return pl.pallas_call(
        kernel,
        out_shape=jax.ShapeDtypeStruct((n, d), x2d.dtype),
        grid=(pl.cdiv(n, tn),),
        in_specs=[
            pl.BlockSpec((tn, d), lambda i: (i, 0)),
            pl.BlockSpec((1, d), lambda i: (0, 0)),
            pl.BlockSpec((1, d), lambda i: (0, 0)),
        ],
        out_specs=pl.BlockSpec((tn, d), lambda i: (i, 0)),
        compiler_params=pltpu.CompilerParams(
            dimension_semantics=("parallel",),
        ),
    )(x2d, a_2, b_2)


# ---------------------------------------------------------------------------
# Kernel 2: residual add  (x + dropout(sublayer_out); dropout == identity/eval)
# ---------------------------------------------------------------------------
def _residual_add_kernel(x_ref, y_ref, o_ref):
    o_ref[...] = x_ref[...] + y_ref[...]


def residual_add_pallas(x2d, y2d, tile_rows=_DEFAULT_TILE_ROWS):
    n, d = x2d.shape
    tn = _tile_rows(n, tile_rows)
    return pl.pallas_call(
        _residual_add_kernel,
        out_shape=jax.ShapeDtypeStruct((n, d), x2d.dtype),
        grid=(pl.cdiv(n, tn),),
        in_specs=[
            pl.BlockSpec((tn, d), lambda i: (i, 0)),
            pl.BlockSpec((tn, d), lambda i: (i, 0)),
        ],
        out_specs=pl.BlockSpec((tn, d), lambda i: (i, 0)),
        compiler_params=pltpu.CompilerParams(
            dimension_semantics=("parallel",),
        ),
    )(x2d, y2d)


# ---------------------------------------------------------------------------
# ResidualAdd module wrapper
# ---------------------------------------------------------------------------
class ResidualAddPallas:
    """x + dropout(sublayer(LayerNorm(x))) with Pallas kernels for LN + add."""

    def __init__(self, size, dropout=0.0, rezero=False, eps=1e-6):
        # LayerNorm.__init__: a_2 = ones(features), b_2 = zeros(features)
        self.a_2 = jnp.ones((size,), dtype=jnp.float32)
        self.b_2 = jnp.zeros((size,), dtype=jnp.float32)
        self.eps = eps
        # TODO(synk): training-mode dropout (random masking) omitted; eval-mode identity used.

    def __call__(self, x, sublayer):
        b, s, d = x.shape
        x2d = x.reshape(b * s, d)
        normed = layernorm_pallas(x2d, self.a_2, self.b_2, self.eps)     # Pallas
        sub_out = sublayer(normed.reshape(b, s, d)).reshape(b * s, d)    # plain JAX glue
        # TODO(synk): for max perf the residual add could be fused into the
        # sublayer's epilogue instead of a standalone memory-bound kernel.
        out = residual_add_pallas(x2d, sub_out)                          # Pallas
        return out.reshape(b, s, d)


# ---------------------------------------------------------------------------
# Pure-JAX reference for verification
# ---------------------------------------------------------------------------
def _reference(x, a_2, b_2, eps, sublayer):
    mean = jnp.mean(x, axis=-1, keepdims=True)
    var_unbiased = jnp.sum((x - mean) ** 2, axis=-1, keepdims=True) / (x.shape[-1] - 1)
    std = jnp.sqrt(var_unbiased)
    normed = a_2 * (x - mean) / (std + eps) + b_2
    return x + sublayer(normed)


if __name__ == "__main__":
    B, S, D = 2, 8, 32

    key = jax.random.PRNGKey(0)
    kx, kw, kb = jax.random.split(key, 3)
    x = jax.random.normal(kx, (B, S, D), dtype=jnp.float32)

    # Example sublayer: deterministic Linear(D -> D) applied in plain JAX.
    W = jax.random.normal(kw, (D, D), dtype=jnp.float32) * 0.02
    bias = jax.random.normal(kb, (D,), dtype=jnp.float32) * 0.02
    sublayer = lambda t: jnp.dot(t, W) + bias

    block = ResidualAddPallas(size=D, dropout=0.1, rezero=False)
    out = block(x, sublayer)
    out = jax.block_until_ready(out)

    ref = _reference(x, block.a_2, block.b_2, block.eps, sublayer)
    if not jnp.allclose(out, ref, atol=1e-4, rtol=1e-4):
        raise AssertionError("Pallas ResidualAdd mismatch vs reference")

    print("KERNEL_OK")
</pallas_src>

<mosaic_0001>
module attributes {stable_mosaic.version = 11 : i64} {
  func.func @_layernorm_kernel(%arg0: i32, %arg1: memref<16x32xf32, #tpu.memory_space<vmem>>, %arg2: memref<1x32xf32, #tpu.memory_space<vmem>>, %arg3: memref<1x32xf32, #tpu.memory_space<vmem>>, %arg4: memref<16x32xf32, #tpu.memory_space<vmem>>) attributes {dimension_semantics = [#tpu.dimension_semantics<parallel>], iteration_bounds = array<i64: 1>, scalar_prefetch = 0 : i64, scratch_operands = 0 : i64, tpu.core_type = #tpu.core_type<tc>, window_params = [{transform_indices = @transform_0, window_bounds = array<i64: 16, 32>}, {pipeline_mode = #tpu.pipeline_mode<synchronous>, transform_indices = @transform_1, window_bounds = array<i64: 1, 32>}, {pipeline_mode = #tpu.pipeline_mode<synchronous>, transform_indices = @transform_2, window_bounds = array<i64: 1, 32>}, {transform_indices = @transform_3, window_bounds = array<i64: 16, 32>}]} {
    %c0 = arith.constant 0 : index
    %c0_0 = arith.constant 0 : index
    %0 = vector.load %arg1[%c0, %c0_0] : memref<16x32xf32, #tpu.memory_space<vmem>>, vector<16x32xf32>
    %cst = arith.constant dense<0.000000e+00> : vector<16xf32>
    %1 = vector.multi_reduction <add>, %0, %cst [1] : vector<16x32xf32> to vector<16xf32>
    %2 = vector.shape_cast %1 : vector<16xf32> to vector<16x1xf32>
    %cst_1 = arith.constant 3.125000e-02 : f32
    %3 = vector.broadcast %cst_1 : f32 to vector<16x1xf32>
    %4 = arith.mulf %2, %3 : vector<16x1xf32>
    %5 = vector.broadcast %4 : vector<16x1xf32> to vector<16x32xf32>
    %6 = arith.subf %0, %5 : vector<16x32xf32>
    %7 = arith.mulf %6, %6 : vector<16x32xf32>
    %cst_2 = arith.constant dense<0.000000e+00> : vector<16xf32>
    %8 = vector.multi_reduction <add>, %7, %cst_2 [1] : vector<16x32xf32> to vector<16xf32>
    %9 = vector.shape_cast %8 : vector<16xf32> to vector<16x1xf32>
    %cst_3 = arith.constant 0.0322580636 : f32
    %10 = vector.broadcast %cst_3 : f32 to vector<16x1xf32>
    %11 = arith.mulf %9, %10 : vector<16x1xf32>
    %12 = math.sqrt %11 : vector<16x1xf32>
    %cst_4 = arith.constant 9.99999997E-7 : f32
    %13 = vector.broadcast %cst_4 : f32 to vector<16x1xf32>
    %14 = arith.addf %12, %13 : vector<16x1xf32>
    %15 = tpu.reciprocal %14 : vector<16x1xf32> -> vector<16x1xf32>
    %16 = vector.broadcast %15 : vector<16x1xf32> to vector<16x32xf32>
    %17 = arith.mulf %6, %16 : vector<16x32xf32>
    %c0_5 = arith.constant 0 : index
    %c0_6 = arith.constant 0 : index
    %18 = vector.load %arg2[%c0_5, %c0_6] : memref<1x32xf32, #tpu.memory_space<vmem>>, vector<1x32xf32>
    %19 = vector.broadcast %18 : vector<1x32xf32> to vector<16x32xf32>
    %20 = arith.mulf %17, %19 : vector<16x32xf32>
    %c0_7 = arith.constant 0 : index
    %c0_8 = arith.constant 0 : index
    %21 = vector.load %arg3[%c0_7, %c0_8] : memref<1x32xf32, #tpu.memory_space<vmem>>, vector<1x32xf32>
    %22 = vector.broadcast %21 : vector<1x32xf32> to vector<16x32xf32>
    %23 = arith.addf %20, %22 : vector<16x32xf32>
    %c0_9 = arith.constant 0 : index
    %c0_10 = arith.constant 0 : index
    %24 = vector.load %arg4[%c0_9, %c0_10] : memref<16x32xf32, #tpu.memory_space<vmem>>, vector<16x32xf32>
    tpu.vector_store %arg4[%c0_9, %c0_10], %23 {strides = array<i32>} : memref<16x32xf32, #tpu.memory_space<vmem>>, vector<16x32xf32>,
    return
  }
  func.func @transform_0(%arg0: i32) -> (i32, i32) {
    %c0_i32 = arith.constant 0 : i32
    %c0_i32_0 = arith.constant 0 : i32
    return %arg0, %c0_i32 : i32, i32
  }
  func.func @transform_1(%arg0: i32) -> (i32, i32) {
    %c0_i32 = arith.constant 0 : i32
    %c0_i32_0 = arith.constant 0 : i32
    %c0_i32_1 = arith.constant 0 : i32
    return %c0_i32, %c0_i32_0 : i32, i32
  }
  func.func @transform_2(%arg0: i32) -> (i32, i32) {
    %c0_i32 = arith.constant 0 : i32
    %c0_i32_0 = arith.constant 0 : i32
    %c0_i32_1 = arith.constant 0 : i32
    return %c0_i32, %c0_i32_0 : i32, i32
  }
  func.func @transform_3(%arg0: i32) -> (i32, i32) {
    %c0_i32 = arith.constant 0 : i32
    %c0_i32_0 = arith.constant 0 : i32
    return %arg0, %c0_i32 : i32, i32
  }
}

</mosaic_0001>

<bundles_post_ra>
// kernel: tpu_custom_call.1
= control target key start
LH: loop header
LB: loop body
LE: loop exit
PB: predicated region body
PF: predicated region fallthrough
CT: control target
= control target key end

     0   :  { %8 = vsyncpa [#allocation3], 0  ;;  %s215_s0 = inlined_call_operand.hbm [shape: f32[16,32], index: 0, kind: input, shape index: {}]   ;;  %s216_s1 = inlined_call_operand.vmem [shape: f32[1,32], index: 1, kind: input, shape index: {}]   ;;  %s217_s2 = inlined_call_operand.vmem [shape: f32[1,32], index: 2, kind: input, shape index: {}]   ;;  %s218_s3 = inlined_call_operand.hbm [shape: f32[16,32], index: 3, kind: output, shape index: {}]  }
   0x1   :  { %9 = vsyncpa [#allocation4], 0  ;;  %s167_s12 = smov [#allocation2]  }
   0x2   :  { %s15_s13 = sshll.u32 %s167_s12, 4  ;;  %s16_s13 = int_to_ptr.vmem [resolvable:$true] %s15_s13 }
   0x3   :  { %s131_s14 = scalar_lea.vmem %s16_s13, 256  ;;  %p136_p1 = scmp.lt.s32.totalorder %s16_s13, %s16_s13 }
   0x4   :  { %p132_p0 = scmp.ne.s32.totalorder %s16_s13, %s131_s14  ;;  %p137_p2 = scmp.lt.s32.totalorder %s131_s14, %s131_s14 }
   0x6   :  { %p138_p3 = por %p137_p2, %p136_p1 }
   0x8   :  { %p139_p4 = pnand %p138_p3, %p132_p0 }
   0xa   :  { %142 = shalt.err (!%p139_p4)
}
   0xb   :  { %s168_s15 = smov 128   ;;  %s169_s16 = smov 8  }
   0xc   :  { %21 = dma.hbm_to_vmem [thread:$0]  %s215_s0, 256, %s16_s13, [#allocation3], %s168_s15, %s168_s15, %s169_s16  }
   0xd   :  { %163 = dma.done.wait [#allocation3], 256  }
   0xe   :  { %164 = vsyncadd [#allocation3], 4294967040  ;;  %vm31_vm0 = vcmask 261120   ;;  %v29_v0 = vld [vmem:[#allocation2] sm:$0xff]  ;;  %v30_v1 = vld [vmem:[#allocation2 + $0x8] sm:$0xff]  ;;  %s170_s22 = smov [#allocation5]  }
   0xf   :  { %v32_v2 = vsel %vm31_vm0, %v29_v0, 0.0  ;;  %v35_v3 = vsel %vm31_vm0, %v30_v1, 0.0  ;;  %v109_v31 = vld [vmem:[%s216_s1] ss:$0 sm:$0xff]  ;;  %s97_s23 = sshll.u32 %s170_s22, 4  ;;  %s98_s23 = int_to_ptr.vmem [resolvable:$true] %s97_s23 }
  0x10   :  { %33 = vadd.xlane.f32.xlu0 %v32_v2  ;;  %v110_v33 = vld [vmem:[%s217_s2] ss:$0 sm:$0xff]  ;;  %s143_s24 = scalar_lea.vmem %s98_s23, 256  ;;  %p148_p6 = scmp.lt.s32.totalorder %s98_s23, %s98_s23 }
  0x11   :  { %p144_p5 = scmp.ne.s32.totalorder %s98_s23, %s143_s24  ;;  %p149_p7 = scmp.lt.s32.totalorder %s143_s24, %s143_s24 }
  0x13   :  { %p150_p8 = por %p149_p7, %p148_p6 }
  0x14   :  { %36 = vadd.xlane.f32.xlu0 %v35_v3 }
  0x15   :  { %p151_p9 = pnand %p150_p8, %p144_p5 }
  0x99   :  { %v34_v4 = vpop.xlane.xlu0 %33 }
  0x9a   :  { %v38_v5 = vmul.f32 0.03125, %v34_v4 }
  0x9c   :  { %v40_v6 = vsub.f32 %v29_v0, %v38_v5 }
  0x9d   :  { %v37_v7 = vpop.xlane.xlu0 %36 }
  0x9e   :  { %v39_v8 = vmul.f32 0.03125, %v37_v7  ;;  %v42_v9 = vmul.f32 %v40_v6, %v40_v6 }
  0xa0   :  { %v41_v10 = vsub.f32 %v30_v1, %v39_v8  ;;  %v44_v11 = vsel %vm31_vm0, %v42_v9, 0.0 }
  0xa1   :  { %45 = vadd.xlane.f32.xlu1 %v44_v11 }
  0xa2   :  { %v43_v12 = vmul.f32 %v41_v10, %v41_v10 }
  0xa4   :  { %v47_v13 = vsel %vm31_vm0, %v43_v12, 0.0 }
  0xa5   :  { %48 = vadd.xlane.f32.xlu1 %v47_v13 }
 0x12a   :  { %v46_v14 = vpop.xlane.xlu1 %45 }
 0x12b   :  { %v50_v15 = vmul.f32 0.032258064, %v46_v14 }
 0x12d   :  { %115 = vrsqrt.f32 %v50_v15  ;;  %vm54_vm1 = vcmp.eq.f32.partialorder %v50_v15, inf  ;;  %v57_v20 = vand.u32 2147483648, %v50_v15  ;;  %vm56_vm2 = vcmp.eq.f32.partialorder %v50_v15, 0.0 }
 0x12e   :  { %v49_v16 = vpop.xlane.xlu1 %48 }
 0x12f   :  { %v51_v17 = vmul.f32 0.032258064, %v49_v16 }
 0x131   :  { %117 = vrsqrt.f32 %v51_v17  ;;  %vm61_vm3 = vcmp.eq.f32.partialorder %v51_v17, inf  ;;  %v64_v26 = vand.u32 2147483648, %v51_v17  ;;  %vm63_vm4 = vcmp.eq.f32.partialorder %v51_v17, 0.0 }
 0x13a   :  { %v116_v18 = vpop.eup %115 }
 0x13b   :  { %v53_v19 = vmul.f32 %v116_v18, %v50_v15 }
 0x13d   :  { %v55_v21 = vsel %vm54_vm1, %v50_v15, %v53_v19 }
 0x13e   :  { %v118_v22 = vpop.eup %117  ;;  %v58_v23 = vsel %vm56_vm2, %v57_v20, %v55_v21 }
 0x13f   :  { %v66_v24 = vadd.f32 1e-06, %v58_v23  ;;  %v60_v25 = vmul.f32 %v118_v22, %v51_v17 }
 0x141   :  { %119 = vrcp.f32 %v66_v24  ;;  %v62_v27 = vsel %vm61_vm3, %v51_v17, %v60_v25 }
 0x142   :  { %v65_v28 = vsel %vm63_vm4, %v64_v26, %v62_v27 }
 0x143   :  { %v67_v29 = vadd.f32 1e-06, %v65_v28 }
 0x145   :  { %121 = vrcp.f32 %v67_v29 }
 0x14e   :  { %v120_v30 = vpop.eup %119 }
 0x14f   :  { %v70_v32 = vmul.f32 %v120_v30, %v40_v6 }
 0x151   :  { %v79_v34 = vmul.f32 %v109_v31, %v70_v32 }
 0x152   :  { %v122_v35 = vpop.eup %121 }
 0x153   :  { %v71_v36 = vmul.f32 %v122_v35, %v41_v10  ;;  %v88_v37 = vadd.f32 %v110_v33, %v79_v34 }
 0x155   :  { %v80_v38 = vmul.f32 %v109_v31, %v71_v36  ;;  %90 = vst.msk [vmem:[#allocation5] sm:$0xff] %vm31_vm0, %v88_v37 }
 0x157   :  { %v89_v39 = vadd.f32 %v110_v33, %v80_v38 }
 0x159   :  { %91 = vst.msk [vmem:[#allocation5 + $0x8] sm:$0xff] %vm31_vm0, %v89_v39 }
 0x15a   :  { %154 = shalt.err (!%p151_p9)
}
 0x15b   :  { %103 = dma.vmem_to_hbm [thread:$0]  %s98_s23, 256, %s218_s3, [#allocation4], %s168_s15, %s168_s15, %s169_s16  }
 0x15c   :  { %165 = dma.done.wait [#allocation4], 256  }
 0x15d   :  { %166 = vsyncadd [#allocation4], 4294967040 }
 0x15e   :  { %107 = vsyncpa [#allocation3], 1 }
 0x15f   :  { %108 = vsyncpa [#allocation4], 1 }

</bundles_post_ra>
